<compile_context>
chip_gen: v7x
topology: tpu7x:2x2x1
jax: 0.10.0
libtpu: 0.0.40
codegen_flags: <defaults>
</compile_context>

<pallas_src>
import jax
import jax.numpy as jnp
from jax.experimental import pallas as pl
from jax.experimental.pallas import tpu as pltpu

_LANE = 128      # vreg lane width   (last dim alignment)
_SUBLANE = 8     # vreg sublane width (second-to-last dim alignment)


def _round_up(x, m):
    return ((x + m - 1) // m) * m


# ---------------------------------------------------------------------------
# Kernels
# ---------------------------------------------------------------------------
def _logreg_kernel(x_ref, w_ref, b_ref, o_ref):
    """Single-pass path: whole D fits in VMEM -> one MXU matmul + VPU bias add."""
    acc = jnp.dot(x_ref[...], w_ref[...], preferred_element_type=jnp.float32)
    o_ref[...] = (acc + b_ref[...].astype(jnp.float32)).astype(o_ref.dtype)


def _logreg_kernel_ktiled(x_ref, w_ref, b_ref, o_ref, acc_ref):
    """K-tiled path: grid=(n_tiles, k_tiles); f32 accumulator in VMEM scratch."""
    k = pl.program_id(1)

    @pl.when(k == 0)
    def _init():
        acc_ref[...] = jnp.zeros_like(acc_ref)

    acc_ref[...] += jnp.dot(x_ref[...], w_ref[...],
                            preferred_element_type=jnp.float32)

    @pl.when(k == pl.num_programs(1) - 1)
    def _finalize():
        o_ref[...] = (acc_ref[...] + b_ref[...].astype(jnp.float32)
                      ).astype(o_ref.dtype)


# ---------------------------------------------------------------------------
# Tiling / VMEM planning (wrapper-side Python only)
# ---------------------------------------------------------------------------
def _vmem_capacity_bytes():
    """Per-core VMEM capacity; conservative fallback if the query fails."""
    fallback = 64 * 1024 * 1024          # v7x per-TensorCore VMEM (smallest gen)
    try:
        info = pltpu.get_tpu_info()
    except Exception:
        return fallback
    for name in ("vmem_capacity_bytes", "vmem_size_bytes", "vmem_bytes"):
        v = getattr(info, name, None)
        if isinstance(v, int) and v > 0:
            return v
    return fallback


def _vmem_estimate(tile_n, tile_k, k_tiles, c_pad, itemsize):
    # BlockSpec double-buffers every operand (even constant-index W / b).
    est = (2 * tile_n * tile_k * itemsize        # X tiles
           + 2 * tile_k * c_pad * itemsize       # W tiles
           + 2 * 1 * c_pad * itemsize            # bias
           + 2 * tile_n * c_pad * itemsize       # output tiles
           + tile_n * c_pad * 4)                 # live f32 matmul result
    if k_tiles > 1:
        est += tile_n * c_pad * 4                # f32 accumulator scratch
    return est


def _plan_tiles(N, D, C, itemsize, budget):
    c_pad = _round_up(C, _LANE)
    n_ceil = _round_up(N, _SUBLANE)

    # Candidate batch tiles (MXU / pipeline friendly, descending).
    if n_ceil <= _LANE:
        n_cands = [n_ceil]
    else:
        cap_n = _round_up(n_ceil, _LANE)
        n_cands = [t for t in (2048, 1024, 512, 256, 128) if t <= cap_n] or [_LANE]

    # Candidate K (feature-dim) tiles, only used if untiled-D blows the budget.
    cap_k = _round_up(D, _LANE)
    k_cands = [t for t in (2048, 1024, 512, 256, 128) if t < cap_k]

    # Phase A: keep D untiled (single MXU reduction pass, no accumulator traffic).
    for tn in n_cands:
        if _vmem_estimate(tn, D, 1, c_pad, itemsize) <= budget:
            return tn, D, 1, c_pad

    # Phase B: tile K instead of starving the MXU with tiny batch tiles.
    for tn in n_cands:
        for tk in k_cands:
            kt = _round_up(D, tk) // tk
            if kt > 1 and _vmem_estimate(tn, tk, kt, c_pad, itemsize) <= budget:
                return tn, tk, kt, c_pad

    # Fallback: smallest considered tiles (still correct; compiler may spill).
    # TODO(synk): add a class (C) grid axis for problems where even this blows VMEM.
    tn = n_cands[-1]
    tk = k_cands[-1] if k_cands else D
    kt = (_round_up(D, tk) // tk) if k_cands else 1
    return tn, tk, kt, c_pad


def _refine_tile_n(tile_n, n_ceil):
    """Shrink tile_n (kept 128-aligned) to limit zero-padding waste and to give
    the grid >= 2 batch tiles so a v7x megacore can split it across both TCs."""
    if n_ceil <= _LANE or tile_n <= _LANE:
        return tile_n, _round_up(n_ceil, tile_n)
    thresh = max(_LANE, n_ceil // 8)             # allow <= ~12.5% padded rows
    opts = []
    t = tile_n
    while t >= _LANE:
        p = _round_up(n_ceil, t)
        opts.append((t, p, p // t))              # (tile, padded_N, num_tiles)
        t -= _LANE
    ok = [o for o in opts if o[1] - n_ceil <= thresh]
    if ok:
        multi = [o for o in ok if o[2] >= 2]
        pick = max(multi or ok, key=lambda o: o[0])
    else:
        pick = min(opts, key=lambda o: (o[1], -o[0]))
    return pick[0], pick[1]


# ---------------------------------------------------------------------------
# Forward wrapper (matches PTLogreg.forward: X.mm(W) + b)
# ---------------------------------------------------------------------------
def pt_logreg_forward(x, w, b, *, compute_dtype=None, max_vmem_bytes=None):
    N, D = x.shape
    D2, C = w.shape
    assert D == D2 and b.shape == (C,)

    out_dtype = x.dtype
    if compute_dtype is not None:               # optional bf16 MXU path
        x = x.astype(compute_dtype)
        w = w.astype(compute_dtype)
    itemsize = jnp.dtype(x.dtype).itemsize

    vmem_cap = _vmem_capacity_bytes()
    budget = (3 * vmem_cap) // 4                # ~48 MiB v7x, ~96 MiB v5e/v6e
    if max_vmem_bytes is not None:
        budget = min(budget, int(max_vmem_bytes))
    vmem_limit = (7 * vmem_cap) // 8            # explicit scoped-VMEM limit

    tile_n, tile_k, k_tiles, c_pad = _plan_tiles(N, D, C, itemsize, budget)
    n_ceil = _round_up(N, _SUBLANE)
    tile_n, n_pad = _refine_tile_n(tile_n, n_ceil)
    d_pad = tile_k * k_tiles

    # Zero padding is exact for X@W+b; padded rows/cols are sliced off below.
    x_p = x if (n_pad == N and d_pad == D) else jnp.pad(
        x, ((0, n_pad - N), (0, d_pad - D)))
    w_p = w if (d_pad == D and c_pad == C) else jnp.pad(
        w, ((0, d_pad - D), (0, c_pad - C)))
    b_p = (b if c_pad == C else jnp.pad(b, (0, c_pad - C)))
    b_p = b_p.astype(jnp.float32).reshape(1, c_pad)

    n_tiles = n_pad // tile_n
    cost = pl.CostEstimate(
        flops=2 * n_pad * d_pad * c_pad,
        transcendentals=0,
        bytes_accessed=(N * D + D * C + C + N * C) * itemsize,
    )

    if k_tiles == 1:
        out = pl.pallas_call(
            _logreg_kernel,
            out_shape=jax.ShapeDtypeStruct((n_pad, c_pad), out_dtype),
            grid=(n_tiles,),
            in_specs=[
                pl.BlockSpec((tile_n, d_pad), lambda i: (i, 0)),   # X: batch-tiled
                pl.BlockSpec((d_pad, c_pad), lambda i: (0, 0)),    # W: VMEM-resident
                pl.BlockSpec((1, c_pad), lambda i: (0, 0)),        # b: VMEM-resident
            ],
            out_specs=pl.BlockSpec((tile_n, c_pad), lambda i: (i, 0)),
            compiler_params=pltpu.CompilerParams(
                dimension_semantics=("parallel",),
                vmem_limit_bytes=vmem_limit,
            ),
            cost_estimate=cost,
        )(x_p, w_p, b_p)
    else:
        out = pl.pallas_call(
            _logreg_kernel_ktiled,
            out_shape=jax.ShapeDtypeStruct((n_pad, c_pad), out_dtype),
            grid=(n_tiles, k_tiles),                               # reduction last
            in_specs=[
                pl.BlockSpec((tile_n, tile_k), lambda i, k: (i, k)),
                pl.BlockSpec((tile_k, c_pad), lambda i, k: (k, 0)),
                pl.BlockSpec((1, c_pad), lambda i, k: (0, 0)),
            ],
            out_specs=pl.BlockSpec((tile_n, c_pad), lambda i, k: (i, 0)),
            scratch_shapes=[pltpu.VMEM((tile_n, c_pad), jnp.float32)],
            compiler_params=pltpu.CompilerParams(
                dimension_semantics=("parallel", "arbitrary"),
                vmem_limit_bytes=vmem_limit,
            ),
            cost_estimate=cost,
        )(x_p, w_p, b_p)

    return out[:N, :C]


if __name__ == "__main__":
    # 1) Small shapes consistent with the module: N datapoints of dim D, C classes.
    N, D, C = 8, 32, 16
    kx, kw, kb = jax.random.split(jax.random.PRNGKey(0), 3)
    X = jax.random.normal(kx, (N, D), dtype=jnp.float32)
    W = jax.random.normal(kw, (D, C), dtype=jnp.float32)
    b = jax.random.normal(kb, (C,), dtype=jnp.float32)

    out = jax.block_until_ready(pt_logreg_forward(X, W, b))
    ref = X @ W + b
    assert out.shape == (N, C)
    assert jnp.allclose(out, ref, atol=1e-5, rtol=1e-5), "small case mismatch"

    # 2) Ragged batch + non-128 class count (exercises batch tiling / lane padding).
    N2, D2, C2 = 300, 192, 10
    k2x, k2w, k2b = jax.random.split(jax.random.PRNGKey(1), 3)
    X2 = jax.random.normal(k2x, (N2, D2), dtype=jnp.float32)
    W2 = jax.random.normal(k2w, (D2, C2), dtype=jnp.float32)
    b2 = jax.random.normal(k2b, (C2,), dtype=jnp.float32)
    out2 = jax.block_until_ready(pt_logreg_forward(X2, W2, b2))
    ref2 = X2 @ W2 + b2
    assert out2.shape == (N2, C2)
    assert jnp.allclose(out2, ref2, atol=2.5e-1, rtol=2.5e-2), "ragged case mismatch"

    # 3) Force the K-tiled accumulator path with an artificially small budget.
    N3, D3, C3 = 128, 512, 40
    k3x, k3w, k3b = jax.random.split(jax.random.PRNGKey(2), 3)
    X3 = jax.random.normal(k3x, (N3, D3), dtype=jnp.float32)
    W3 = jax.random.normal(k3w, (D3, C3), dtype=jnp.float32)
    b3 = jax.random.normal(k3b, (C3,), dtype=jnp.float32)
    out3 = jax.block_until_ready(
        pt_logreg_forward(X3, W3, b3, max_vmem_bytes=1_000_000))
    ref3 = X3 @ W3 + b3
    assert out3.shape == (N3, C3)
    assert jnp.allclose(out3, ref3, atol=2.5e-1, rtol=2.5e-2), "k-tiled case mismatch"

    print("KERNEL_OK")
</pallas_src>

<mosaic_0001>
module attributes {stable_mosaic.version = 11 : i64} {
  func.func @_logreg_kernel(%arg0: i32, %arg1: memref<8x32xf32, #tpu.memory_space<vmem>>, %arg2: memref<32x128xf32, #tpu.memory_space<vmem>>, %arg3: memref<1x128xf32, #tpu.memory_space<vmem>>, %arg4: memref<8x128xf32, #tpu.memory_space<vmem>>) attributes {dimension_semantics = [#tpu.dimension_semantics<parallel>], iteration_bounds = array<i64: 1>, scalar_prefetch = 0 : i64, scratch_operands = 0 : i64, tpu.core_type = #tpu.core_type<tc>, window_params = [{transform_indices = @transform_0, window_bounds = array<i64: 8, 32>}, {pipeline_mode = #tpu.pipeline_mode<synchronous>, transform_indices = @transform_1, window_bounds = array<i64: 32, 128>}, {pipeline_mode = #tpu.pipeline_mode<synchronous>, transform_indices = @transform_2, window_bounds = array<i64: 1, 128>}, {transform_indices = @transform_3, window_bounds = array<i64: 8, 128>}]} {
    %c0 = arith.constant 0 : index
    %c0_0 = arith.constant 0 : index
    %0 = vector.load %arg1[%c0, %c0_0] : memref<8x32xf32, #tpu.memory_space<vmem>>, vector<8x32xf32>
    %c0_1 = arith.constant 0 : index
    %c0_2 = arith.constant 0 : index
    %1 = vector.load %arg2[%c0_1, %c0_2] : memref<32x128xf32, #tpu.memory_space<vmem>>, vector<32x128xf32>
    %cst = arith.constant dense<0.000000e+00> : vector<8x128xf32>
    %2 = tpu.matmul %0, %1, %cst {dimension_numbers = #tpu.dot_dimension_numbers<[1], [0], [0], [1], [0, 0, 1, 1], [], []>} : vector<8x32xf32>, vector<32x128xf32>, vector<8x128xf32> -> vector<8x128xf32>
    %c0_3 = arith.constant 0 : index
    %c0_4 = arith.constant 0 : index
    %3 = vector.load %arg3[%c0_3, %c0_4] : memref<1x128xf32, #tpu.memory_space<vmem>>, vector<1x128xf32>
    %4 = vector.broadcast %3 : vector<1x128xf32> to vector<8x128xf32>
    %5 = arith.addf %2, %4 : vector<8x128xf32>
    %c0_5 = arith.constant 0 : index
    %c0_6 = arith.constant 0 : index
    %6 = vector.load %arg4[%c0_5, %c0_6] : memref<8x128xf32, #tpu.memory_space<vmem>>, vector<8x128xf32>
    tpu.vector_store %arg4[%c0_5, %c0_6], %5 {strides = array<i32>} : memref<8x128xf32, #tpu.memory_space<vmem>>, vector<8x128xf32>,
    return
  }
  func.func @transform_0(%arg0: i32) -> (i32, i32) {
    %c0_i32 = arith.constant 0 : i32
    %c0_i32_0 = arith.constant 0 : i32
    return %arg0, %c0_i32 : i32, i32
  }
  func.func @transform_1(%arg0: i32) -> (i32, i32) {
    %c0_i32 = arith.constant 0 : i32
    %c0_i32_0 = arith.constant 0 : i32
    %c0_i32_1 = arith.constant 0 : i32
    return %c0_i32, %c0_i32_0 : i32, i32
  }
  func.func @transform_2(%arg0: i32) -> (i32, i32) {
    %c0_i32 = arith.constant 0 : i32
    %c0_i32_0 = arith.constant 0 : i32
    %c0_i32_1 = arith.constant 0 : i32
    return %c0_i32, %c0_i32_0 : i32, i32
  }
  func.func @transform_3(%arg0: i32) -> (i32, i32) {
    %c0_i32 = arith.constant 0 : i32
    %c0_i32_0 = arith.constant 0 : i32
    return %arg0, %c0_i32 : i32, i32
  }
}

</mosaic_0001>

<bundles_post_ra>
// kernel: tpu_custom_call.1
= control target key start
LH: loop header
LB: loop body
LE: loop exit
PB: predicated region body
PF: predicated region fallthrough
CT: control target
= control target key end

     0   :  { %8 = vsyncpa [#allocation3], 0  ;;  %s322_s0 = inlined_call_operand.hbm [shape: f32[8,32], index: 0, kind: input, shape index: {}]   ;;  %s323_s1 = inlined_call_operand.hbm [shape: f32[32,128], index: 1, kind: input, shape index: {}]   ;;  %s324_s2 = inlined_call_operand.vmem [shape: f32[1,128], index: 2, kind: input, shape index: {}]   ;;  %s325_s3 = inlined_call_operand.hbm [shape: f32[8,128], index: 3, kind: output, shape index: {}]  }
   0x1   :  { %9 = vsyncpa [#allocation6], 0 }
   0x2   :  { %10 = vsyncpa [#allocation4], 0  ;;  %s248_s12 = smov [#allocation2]   ;;  %s249_s14 = smov [#allocation5]  }
   0x3   :  { %s17_s13 = sshll.u32 %s248_s12, 4  ;;  %s26_s15 = sshll.u32 %s249_s14, 4  ;;  %s18_s13 = int_to_ptr.vmem [resolvable:$true] %s17_s13  ;;  %s276_s15 = int_to_ptr.vmem [resolvable:$true] %s26_s15 }
   0x4   :  { %s176_s18 = scalar_lea.hbm %s322_s0, 128 }
   0x5   :  { %p177_p0 = scmp.ne.s32.totalorder %s322_s0, %s176_s18  ;;  %p180_p1 = scmp.lt.u32.totalorder %s176_s18, %s322_s0 }
   0x7   :  { %p182_p2 = pnand %p180_p1, %p177_p0 }
   0x9   :  { %185 = shalt.err (!%p182_p2)
}
   0xa   :  { %s186_s23 = scalar_lea.vmem %s18_s13, 128  ;;  %p191_p4 = scmp.lt.s32.totalorder %s18_s13, %s18_s13 }
   0xb   :  { %p187_p3 = scmp.ne.s32.totalorder %s18_s13, %s186_s23  ;;  %p192_p5 = scmp.lt.s32.totalorder %s186_s23, %s186_s23 }
   0xd   :  { %p193_p6 = por %p192_p5, %p191_p4 }
   0xf   :  { %p194_p7 = pnand %p193_p6, %p187_p3 }
  0x11   :  { %197 = shalt.err (!%p194_p7)
}
  0x12   :  { %20 = dma.hbm_to_vmem [thread:$0]  %s322_s0, 128, %s18_s13, [#allocation3]  }
  0x13   :  { %s198_s28 = scalar_lea.hbm %s323_s1, 512 }
  0x14   :  { %p199_p8 = scmp.ne.s32.totalorder %s323_s1, %s198_s28  ;;  %p202_p9 = scmp.lt.u32.totalorder %s198_s28, %s323_s1 }
  0x16   :  { %p204_p10 = pnand %p202_p9, %p199_p8 }
  0x18   :  { %207 = shalt.err (!%p204_p10)
}
  0x19   :  { %s208_s6 = scalar_lea.vmem %s276_s15, 512  ;;  %p213_p12 = scmp.lt.s32.totalorder %s276_s15, %s276_s15 }
  0x1a   :  { %p209_p11 = scmp.ne.s32.totalorder %s276_s15, %s208_s6  ;;  %p214_p13 = scmp.lt.s32.totalorder %s208_s6, %s208_s6 }
  0x1c   :  { %p215_p0 = por %p214_p13, %p213_p12 }
  0x1e   :  { %p216_p1 = pnand %p215_p0, %p209_p11 }
  0x20   :  { %219 = shalt.err (!%p216_p1)
}
  0x21   :  { %s250_s0 = smov 128   ;;  %s251_s7 = smov 8  }
  0x22   :  { %32 = dma.hbm_to_vmem [thread:$0]  %s323_s1, 512, %s276_s15, [#allocation6], %s250_s0, %s250_s0, %s251_s7  }
  0x23   :  { %242 = dma.done.wait [#allocation3], 128  }
  0x24   :  { %243 = vsyncadd [#allocation3], 4294967168 }
  0x25   :  { %244 = dma.done.wait [#allocation6], 512  }
  0x26   :  { %245 = vsyncadd [#allocation6], 4294966784  ;;  %v252_v0 = vmov 0.0|0.0   ;;  %vm253_vm0 = vmmov 0   ;;  %v254_v1 = vmov 0.0   ;;  %v42_v2 = vld [vmem:[#allocation5] sm:$0xff] }
  0x27   :  { %162 = vmatprep.subr.bf16.mxu0 %v252_v0  ;;  %159 = vmatprep.mubr.msk.f32.mxu0 %vm253_vm0, %v254_v1  ;;  %v43_v3 = vld [vmem:[#allocation5 + $0x8] sm:$0xff]  ;;  %v44_v4 = vld [vmem:[#allocation5 + $0x10] sm:$0xff]  ;;  %v45_v6 = vld [vmem:[#allocation5 + $0x18] sm:$0xff]  ;;  %vm53_vm1 = vcmask 261120   ;;  %s255_s11 = smov [#allocation7]  }
  0x28   :  { %v163_v5 = vpack.c.bf16 %v43_v3, %v42_v2  ;;  %v166_v7 = vpack.c.bf16 %v45_v6, %v44_v4  ;;  %v41_v8 = vld [vmem:[#allocation2] sm:$0xff]  ;;  %s134_s12 = sshll.u32 %s255_s11, 4  ;;  %s135_s12 = int_to_ptr.vmem [resolvable:$true] %s134_s12 }
  0x29   :  { %v144_v9 = vld [vmem:[%s324_s2] ss:$0 sm:$0xff]  ;;  %s220_s13 = scalar_lea.vmem %s135_s12, 128  ;;  %p225_p3 = scmp.lt.s32.totalorder %s135_s12, %s135_s12 }
  0x2a   :  { %164 = vmatpush3.bf16.msra.mxu0 %v163_v5  ;;  %p221_p2 = scmp.ne.s32.totalorder %s135_s12, %s220_s13  ;;  %p226_p4 = scmp.lt.s32.totalorder %s220_s13, %s220_s13 }
  0x2b   :  { %165 = vmatprep.subr.bf16.mxu0 %v252_v0 }
  0x2c   :  { %p227_p5 = por %p226_p4, %p225_p3 }
  0x2e   :  { %167 = vmatpush3.bf16.msra.mxu0 %v166_v7  ;;  %p228_p6 = pnand %p227_p5, %p221_p2 }
  0x31   :  { %160 = vmatmul.mubr.msk.f32.vlgmr.msra.gmra.mrb[0].mxu0 %vm53_vm1, %v41_v8 }
 0x104   :  { %v123_v10 = vpop.f32.mrb[0].mxu0 }
 0x105   :  { %v124_v11 = vadd.f32 %v144_v9, %v123_v10  ;;  %v161_v12 = vpop.f32.mrb[1].mxu0 }
 0x107   :  { %127 = vst [vmem:[#allocation7] sm:$0xff] %v124_v11 }
 0x108   :  { %231 = shalt.err (!%p228_p6)
}
 0x109   :  { %s232_s16 = scalar_lea.hbm %s325_s3, 128 }
 0x10a   :  { %p233_p7 = scmp.ne.s32.totalorder %s325_s3, %s232_s16  ;;  %p236_p8 = scmp.lt.u32.totalorder %s232_s16, %s325_s3 }
 0x10c   :  { %p238_p9 = pnand %p236_p8, %p233_p7 }
 0x10e   :  { %241 = shalt.err (!%p238_p9)
}
 0x10f   :  { %137 = dma.vmem_to_hbm [thread:$0]  %s135_s12, 128, %s325_s3, [#allocation4]  }
 0x110   :  { %246 = dma.done.wait [#allocation4], 128  }
 0x111   :  { %247 = vsyncadd [#allocation4], 4294967168 }
 0x112   :  { %141 = vsyncpa [#allocation3], 1 }
 0x113   :  { %142 = vsyncpa [#allocation6], 1 }
 0x114   :  { %143 = vsyncpa [#allocation4], 1 }

</bundles_post_ra>
